<compile_context>
chip_gen: v7x
topology: tpu7x:2x2x1
jax: 0.10.0
libtpu: 0.0.40
codegen_flags: <defaults>
</compile_context>

<pallas_src>
import functools

import jax
import jax.numpy as jnp
from jax import lax
from jax.experimental import pallas as pl
from jax.experimental.pallas import tpu as pltpu


def _round_up(x, m):
    return (x + m - 1) // m * m


def _fused_stack_kernel(x_ref, w0_ref, w1_ref, b_ref, o_ref, *, dilations):
    # x_ref: (1, C, Tp)  w0_ref/w1_ref: (L, C, C)  b_ref: (L, C, 1)  o_ref: (1, C, Tp)
    x = x_ref[0]                                              # (C, Tp) f32
    C, Tp = x.shape
    # Time (lane) index, hoisted once and reused for every layer's causal mask.
    col = lax.broadcasted_iota(jnp.int32, (C, Tp), 1)
    for l, d in enumerate(dilations):
        # x_prev[:, t] = x[:, t - d] for t >= d else 0 — the causal left pad of
        # F.pad(x, (d, 0)) followed by a dilation-d, kernel_size-2 conv.
        x_roll = pltpu.roll(x, shift=d, axis=1)               # x[:, (t - d) mod Tp]
        x_prev = jnp.where(col >= d, x_roll, 0.0)
        y = jnp.dot(w0_ref[l], x_prev, preferred_element_type=jnp.float32)
        y = y + jnp.dot(w1_ref[l], x, preferred_element_type=jnp.float32)
        x = y + b_ref[l]                                      # bias broadcast over lanes
    o_ref[0] = x.astype(o_ref.dtype)


def delated_causal_conv(x_ncl, params):
    """Forward pass matching the PyTorch module. x_ncl: (B, C, L) -> (B, C, L)."""
    B, cin0, T = x_ncl.shape
    L = len(params)
    chans = [cin0] + [int(w.shape[0]) for (w, _, _) in params]
    C = _round_up(max(chans), 8)           # common padded channel width (sublane tile)
    Tp = _round_up(T, 128)                 # lane-dense time axis
    dilations = tuple(int(d) for (_, _, d) in params)

    # Pack every layer's two taps into (L, C, C) blocks plus an (L, C, 1) bias.
    W0_all = jnp.zeros((L, C, C), jnp.float32)     # tap on x[t - d]
    W1_all = jnp.zeros((L, C, C), jnp.float32)     # tap on x[t]
    B_all = jnp.zeros((L, C, 1), jnp.float32)
    for l, (w, b, _) in enumerate(params):
        cout, cin = int(w.shape[0]), int(w.shape[1])
        W0_all = W0_all.at[l, :cout, :cin].set(w[:, :, 0])
        W1_all = W1_all.at[l, :cout, :cin].set(w[:, :, 1])
        B_all = B_all.at[l, :cout, 0].set(b)

    # Zero-pad channels to C and time to Tp (right pad; causality keeps the
    # valid columns independent of the padded tail).
    x_pad = jnp.zeros((B, C, Tp), jnp.float32).at[:, :cin0, :T].set(x_ncl)

    kernel = functools.partial(_fused_stack_kernel, dilations=dilations)
    out = pl.pallas_call(
        kernel,
        out_shape=jax.ShapeDtypeStruct((B, C, Tp), jnp.float32),
        grid_spec=pltpu.PrefetchScalarGridSpec(
            num_scalar_prefetch=0,
            grid=(B,),
            in_specs=[
                pl.BlockSpec((1, C, Tp), lambda bi: (bi, 0, 0)),
                pl.BlockSpec((L, C, C), lambda bi: (0, 0, 0)),
                pl.BlockSpec((L, C, C), lambda bi: (0, 0, 0)),
                pl.BlockSpec((L, C, 1), lambda bi: (0, 0, 0)),
            ],
            out_specs=pl.BlockSpec((1, C, Tp), lambda bi: (bi, 0, 0)),
        ),
        compiler_params=pltpu.CompilerParams(dimension_semantics=("parallel",)),
    )(x_pad, W0_all, W1_all, B_all)

    cout_last = int(params[-1][0].shape[0])
    return out[:, :cout_last, :T]


def init_params(key, in_channels, res_channels, layer):
    """Deterministic Conv1d-style (uniform +-1/sqrt(fan_in*k)) init of the stack."""
    dims = [(in_channels, res_channels)]
    for _ in range(1, layer):
        dims.append((res_channels, res_channels))
    dims.append((res_channels, in_channels))
    params = []
    for i, (cin, cout) in enumerate(dims):
        key, kw, kb = jax.random.split(key, 3)
        bound = 1.0 / jnp.sqrt(cin * 2.0)
        w = jax.random.uniform(kw, (cout, cin, 2), jnp.float32, -bound, bound)
        b = jax.random.uniform(kb, (cout,), jnp.float32, -bound, bound)
        params.append((w, b, 2 ** i))        # dilation = 2**i
    return params


def _reference(x_ncl, params):
    """Pure-JAX reference reproducing the PyTorch forward exactly (NCL layout)."""
    x = x_ncl
    for w, b, d in params:
        T = x.shape[-1]
        xp = jnp.pad(x, ((0, 0), (0, 0), (d, 0)))            # causal left pad
        x = (jnp.einsum('oi,bit->bot', w[:, :, 0], xp[:, :, :T])
             + jnp.einsum('oi,bit->bot', w[:, :, 1], xp[:, :, d:d + T])
             + b[None, :, None])
    return x


if __name__ == "__main__":
    key = jax.random.PRNGKey(0)
    in_channels, res_channels, layer = 4, 8, 3     # 4 convs, dilations 1, 2, 4, 8
    B, L = 2, 100                                  # time padded to 128 inside the wrapper
    k_x, k_p = jax.random.split(key)
    x = jax.random.normal(k_x, (B, in_channels, L), jnp.float32)
    params = init_params(k_p, in_channels, res_channels, layer)

    out = jax.block_until_ready(delated_causal_conv(x, params))
    ref = jax.block_until_ready(_reference(x, params))
    assert out.shape == (B, in_channels, L), out.shape
    assert jnp.allclose(out, ref, atol=1e-5, rtol=1e-5), float(jnp.max(jnp.abs(out - ref)))
    print("KERNEL_OK")
</pallas_src>

<mosaic_0001>
module attributes {stable_mosaic.version = 11 : i64} {
  func.func @_fused_stack_kernel(%arg0: i32, %arg1: memref<1x8x128xf32, #tpu.memory_space<vmem>>, %arg2: memref<4x8x8xf32, #tpu.memory_space<vmem>>, %arg3: memref<4x8x8xf32, #tpu.memory_space<vmem>>, %arg4: memref<4x8x1xf32, #tpu.memory_space<vmem>>, %arg5: memref<1x8x128xf32, #tpu.memory_space<vmem>>) attributes {dimension_semantics = [#tpu.dimension_semantics<parallel>], iteration_bounds = array<i64: 2>, scalar_prefetch = 0 : i64, scratch_operands = 0 : i64, tpu.core_type = #tpu.core_type<tc>, window_params = [{transform_indices = @transform_0, window_bounds = array<i64: 1, 8, 128>}, {pipeline_mode = #tpu.pipeline_mode<synchronous>, transform_indices = @transform_1, window_bounds = array<i64: 4, 8, 8>}, {pipeline_mode = #tpu.pipeline_mode<synchronous>, transform_indices = @transform_2, window_bounds = array<i64: 4, 8, 8>}, {pipeline_mode = #tpu.pipeline_mode<synchronous>, transform_indices = @transform_3, window_bounds = array<i64: 4, 8, 1>}, {transform_indices = @transform_4, window_bounds = array<i64: 1, 8, 128>}]} {
    %c0 = arith.constant 0 : index
    %c0_0 = arith.constant 0 : index
    %c0_1 = arith.constant 0 : index
    %0 = vector.load %arg1[%c0, %c0_0, %c0_1] : memref<1x8x128xf32, #tpu.memory_space<vmem>>, vector<1x8x128xf32>
    %1 = vector.shape_cast %0 : vector<1x8x128xf32> to vector<8x128xf32>
    %2 = tpu.iota {dimensions = array<i32: 1>} : vector<8x128xi32>
    %c1_i32 = arith.constant 1 : i32
    %3 = tpu.dynamic_rotate %1 by %c1_i32 dim 1 : vector<8x128xf32>, i32 -> vector<8x128xf32>
    %c1_i32_2 = arith.constant 1 : i32
    %4 = vector.broadcast %c1_i32_2 : i32 to vector<8x128xi32>
    %5 = arith.cmpi sge, %2, %4 : vector<8x128xi32>
    %cst = arith.constant 0.000000e+00 : f32
    %6 = vector.broadcast %cst : f32 to vector<8x128xf32>
    %7 = arith.select %5, %3, %6 : vector<8x128xi1>, vector<8x128xf32>
    %c0_3 = arith.constant 0 : index
    %c0_4 = arith.constant 0 : index
    %c0_5 = arith.constant 0 : index
    %8 = vector.load %arg2[%c0_3, %c0_4, %c0_5] : memref<4x8x8xf32, #tpu.memory_space<vmem>>, vector<1x8x8xf32>
    %9 = vector.shape_cast %8 : vector<1x8x8xf32> to vector<8x8xf32>
    %cst_6 = arith.constant dense<0.000000e+00> : vector<8x128xf32>
    %10 = tpu.matmul %9, %7, %cst_6 {dimension_numbers = #tpu.dot_dimension_numbers<[1], [0], [0], [1], [0, 0, 1, 1], [], []>} : vector<8x8xf32>, vector<8x128xf32>, vector<8x128xf32> -> vector<8x128xf32>
    %c0_7 = arith.constant 0 : index
    %c0_8 = arith.constant 0 : index
    %c0_9 = arith.constant 0 : index
    %11 = vector.load %arg3[%c0_7, %c0_8, %c0_9] : memref<4x8x8xf32, #tpu.memory_space<vmem>>, vector<1x8x8xf32>
    %12 = vector.shape_cast %11 : vector<1x8x8xf32> to vector<8x8xf32>
    %cst_10 = arith.constant dense<0.000000e+00> : vector<8x128xf32>
    %13 = tpu.matmul %12, %1, %cst_10 {dimension_numbers = #tpu.dot_dimension_numbers<[1], [0], [0], [1], [0, 0, 1, 1], [], []>} : vector<8x8xf32>, vector<8x128xf32>, vector<8x128xf32> -> vector<8x128xf32>
    %14 = arith.addf %10, %13 : vector<8x128xf32>
    %c0_11 = arith.constant 0 : index
    %c0_12 = arith.constant 0 : index
    %c0_13 = arith.constant 0 : index
    %15 = vector.load %arg4[%c0_11, %c0_12, %c0_13] : memref<4x8x1xf32, #tpu.memory_space<vmem>>, vector<1x8x1xf32>
    %16 = vector.shape_cast %15 : vector<1x8x1xf32> to vector<8x1xf32>
    %17 = vector.broadcast %16 : vector<8x1xf32> to vector<8x128xf32>
    %18 = arith.addf %14, %17 : vector<8x128xf32>
    %c2_i32 = arith.constant 2 : i32
    %19 = tpu.dynamic_rotate %18 by %c2_i32 dim 1 : vector<8x128xf32>, i32 -> vector<8x128xf32>
    %c2_i32_14 = arith.constant 2 : i32
    %20 = vector.broadcast %c2_i32_14 : i32 to vector<8x128xi32>
    %21 = arith.cmpi sge, %2, %20 : vector<8x128xi32>
    %cst_15 = arith.constant 0.000000e+00 : f32
    %22 = vector.broadcast %cst_15 : f32 to vector<8x128xf32>
    %23 = arith.select %21, %19, %22 : vector<8x128xi1>, vector<8x128xf32>
    %c1 = arith.constant 1 : index
    %c0_16 = arith.constant 0 : index
    %c0_17 = arith.constant 0 : index
    %24 = vector.load %arg2[%c1, %c0_16, %c0_17] : memref<4x8x8xf32, #tpu.memory_space<vmem>>, vector<1x8x8xf32>
    %25 = vector.shape_cast %24 : vector<1x8x8xf32> to vector<8x8xf32>
    %cst_18 = arith.constant dense<0.000000e+00> : vector<8x128xf32>
    %26 = tpu.matmul %25, %23, %cst_18 {dimension_numbers = #tpu.dot_dimension_numbers<[1], [0], [0], [1], [0, 0, 1, 1], [], []>} : vector<8x8xf32>, vector<8x128xf32>, vector<8x128xf32> -> vector<8x128xf32>
    %c1_19 = arith.constant 1 : index
    %c0_20 = arith.constant 0 : index
    %c0_21 = arith.constant 0 : index
    %27 = vector.load %arg3[%c1_19, %c0_20, %c0_21] : memref<4x8x8xf32, #tpu.memory_space<vmem>>, vector<1x8x8xf32>
    %28 = vector.shape_cast %27 : vector<1x8x8xf32> to vector<8x8xf32>
    %cst_22 = arith.constant dense<0.000000e+00> : vector<8x128xf32>
    %29 = tpu.matmul %28, %18, %cst_22 {dimension_numbers = #tpu.dot_dimension_numbers<[1], [0], [0], [1], [0, 0, 1, 1], [], []>} : vector<8x8xf32>, vector<8x128xf32>, vector<8x128xf32> -> vector<8x128xf32>
    %30 = arith.addf %26, %29 : vector<8x128xf32>
    %c1_23 = arith.constant 1 : index
    %c0_24 = arith.constant 0 : index
    %c0_25 = arith.constant 0 : index
    %31 = vector.load %arg4[%c1_23, %c0_24, %c0_25] : memref<4x8x1xf32, #tpu.memory_space<vmem>>, vector<1x8x1xf32>
    %32 = vector.shape_cast %31 : vector<1x8x1xf32> to vector<8x1xf32>
    %33 = vector.broadcast %32 : vector<8x1xf32> to vector<8x128xf32>
    %34 = arith.addf %30, %33 : vector<8x128xf32>
    %c4_i32 = arith.constant 4 : i32
    %35 = tpu.dynamic_rotate %34 by %c4_i32 dim 1 : vector<8x128xf32>, i32 -> vector<8x128xf32>
    %c4_i32_26 = arith.constant 4 : i32
    %36 = vector.broadcast %c4_i32_26 : i32 to vector<8x128xi32>
    %37 = arith.cmpi sge, %2, %36 : vector<8x128xi32>
    %cst_27 = arith.constant 0.000000e+00 : f32
    %38 = vector.broadcast %cst_27 : f32 to vector<8x128xf32>
    %39 = arith.select %37, %35, %38 : vector<8x128xi1>, vector<8x128xf32>
    %c2 = arith.constant 2 : index
    %c0_28 = arith.constant 0 : index
    %c0_29 = arith.constant 0 : index
    %40 = vector.load %arg2[%c2, %c0_28, %c0_29] : memref<4x8x8xf32, #tpu.memory_space<vmem>>, vector<1x8x8xf32>
    %41 = vector.shape_cast %40 : vector<1x8x8xf32> to vector<8x8xf32>
    %cst_30 = arith.constant dense<0.000000e+00> : vector<8x128xf32>
    %42 = tpu.matmul %41, %39, %cst_30 {dimension_numbers = #tpu.dot_dimension_numbers<[1], [0], [0], [1], [0, 0, 1, 1], [], []>} : vector<8x8xf32>, vector<8x128xf32>, vector<8x128xf32> -> vector<8x128xf32>
    %c2_31 = arith.constant 2 : index
    %c0_32 = arith.constant 0 : index
    %c0_33 = arith.constant 0 : index
    %43 = vector.load %arg3[%c2_31, %c0_32, %c0_33] : memref<4x8x8xf32, #tpu.memory_space<vmem>>, vector<1x8x8xf32>
    %44 = vector.shape_cast %43 : vector<1x8x8xf32> to vector<8x8xf32>
    %cst_34 = arith.constant dense<0.000000e+00> : vector<8x128xf32>
    %45 = tpu.matmul %44, %34, %cst_34 {dimension_numbers = #tpu.dot_dimension_numbers<[1], [0], [0], [1], [0, 0, 1, 1], [], []>} : vector<8x8xf32>, vector<8x128xf32>, vector<8x128xf32> -> vector<8x128xf32>
    %46 = arith.addf %42, %45 : vector<8x128xf32>
    %c2_35 = arith.constant 2 : index
    %c0_36 = arith.constant 0 : index
    %c0_37 = arith.constant 0 : index
    %47 = vector.load %arg4[%c2_35, %c0_36, %c0_37] : memref<4x8x1xf32, #tpu.memory_space<vmem>>, vector<1x8x1xf32>
    %48 = vector.shape_cast %47 : vector<1x8x1xf32> to vector<8x1xf32>
    %49 = vector.broadcast %48 : vector<8x1xf32> to vector<8x128xf32>
    %50 = arith.addf %46, %49 : vector<8x128xf32>
    %c8_i32 = arith.constant 8 : i32
    %51 = tpu.dynamic_rotate %50 by %c8_i32 dim 1 : vector<8x128xf32>, i32 -> vector<8x128xf32>
    %c8_i32_38 = arith.constant 8 : i32
    %52 = vector.broadcast %c8_i32_38 : i32 to vector<8x128xi32>
    %53 = arith.cmpi sge, %2, %52 : vector<8x128xi32>
    %cst_39 = arith.constant 0.000000e+00 : f32
    %54 = vector.broadcast %cst_39 : f32 to vector<8x128xf32>
    %55 = arith.select %53, %51, %54 : vector<8x128xi1>, vector<8x128xf32>
    %c3 = arith.constant 3 : index
    %c0_40 = arith.constant 0 : index
    %c0_41 = arith.constant 0 : index
    %56 = vector.load %arg2[%c3, %c0_40, %c0_41] : memref<4x8x8xf32, #tpu.memory_space<vmem>>, vector<1x8x8xf32>
    %57 = vector.shape_cast %56 : vector<1x8x8xf32> to vector<8x8xf32>
    %cst_42 = arith.constant dense<0.000000e+00> : vector<8x128xf32>
    %58 = tpu.matmul %57, %55, %cst_42 {dimension_numbers = #tpu.dot_dimension_numbers<[1], [0], [0], [1], [0, 0, 1, 1], [], []>} : vector<8x8xf32>, vector<8x128xf32>, vector<8x128xf32> -> vector<8x128xf32>
    %c3_43 = arith.constant 3 : index
    %c0_44 = arith.constant 0 : index
    %c0_45 = arith.constant 0 : index
    %59 = vector.load %arg3[%c3_43, %c0_44, %c0_45] : memref<4x8x8xf32, #tpu.memory_space<vmem>>, vector<1x8x8xf32>
    %60 = vector.shape_cast %59 : vector<1x8x8xf32> to vector<8x8xf32>
    %cst_46 = arith.constant dense<0.000000e+00> : vector<8x128xf32>
    %61 = tpu.matmul %60, %50, %cst_46 {dimension_numbers = #tpu.dot_dimension_numbers<[1], [0], [0], [1], [0, 0, 1, 1], [], []>} : vector<8x8xf32>, vector<8x128xf32>, vector<8x128xf32> -> vector<8x128xf32>
    %62 = arith.addf %58, %61 : vector<8x128xf32>
    %c3_47 = arith.constant 3 : index
    %c0_48 = arith.constant 0 : index
    %c0_49 = arith.constant 0 : index
    %63 = vector.load %arg4[%c3_47, %c0_48, %c0_49] : memref<4x8x1xf32, #tpu.memory_space<vmem>>, vector<1x8x1xf32>
    %64 = vector.shape_cast %63 : vector<1x8x1xf32> to vector<8x1xf32>
    %65 = vector.broadcast %64 : vector<8x1xf32> to vector<8x128xf32>
    %66 = arith.addf %62, %65 : vector<8x128xf32>
    %c0_50 = arith.constant 0 : index
    %c0_51 = arith.constant 0 : index
    %c0_52 = arith.constant 0 : index
    %67 = vector.load %arg5[%c0_50, %c0_51, %c0_52] : memref<1x8x128xf32, #tpu.memory_space<vmem>>, vector<1x8x128xf32>
    %68 = vector.shape_cast %67 : vector<1x8x128xf32> to vector<8x128xf32>
    %69 = vector.shape_cast %66 : vector<8x128xf32> to vector<1x8x128xf32>
    tpu.vector_store %arg5[%c0_50, %c0_51, %c0_52], %69 {strides = array<i32>} : memref<1x8x128xf32, #tpu.memory_space<vmem>>, vector<1x8x128xf32>,
    return
  }
  func.func @transform_0(%arg0: i32) -> (i32, i32, i32) {
    %c0_i32 = arith.constant 0 : i32
    %c0_i32_0 = arith.constant 0 : i32
    %c0_i32_1 = arith.constant 0 : i32
    return %arg0, %c0_i32, %c0_i32_0 : i32, i32, i32
  }
  func.func @transform_1(%arg0: i32) -> (i32, i32, i32) {
    %c0_i32 = arith.constant 0 : i32
    %c0_i32_0 = arith.constant 0 : i32
    %c0_i32_1 = arith.constant 0 : i32
    %c0_i32_2 = arith.constant 0 : i32
    return %c0_i32, %c0_i32_0, %c0_i32_1 : i32, i32, i32
  }
  func.func @transform_2(%arg0: i32) -> (i32, i32, i32) {
    %c0_i32 = arith.constant 0 : i32
    %c0_i32_0 = arith.constant 0 : i32
    %c0_i32_1 = arith.constant 0 : i32
    %c0_i32_2 = arith.constant 0 : i32
    return %c0_i32, %c0_i32_0, %c0_i32_1 : i32, i32, i32
  }
  func.func @transform_3(%arg0: i32) -> (i32, i32, i32) {
    %c0_i32 = arith.constant 0 : i32
    %c0_i32_0 = arith.constant 0 : i32
    %c0_i32_1 = arith.constant 0 : i32
    %c0_i32_2 = arith.constant 0 : i32
    return %c0_i32, %c0_i32_0, %c0_i32_1 : i32, i32, i32
  }
  func.func @transform_4(%arg0: i32) -> (i32, i32, i32) {
    %c0_i32 = arith.constant 0 : i32
    %c0_i32_0 = arith.constant 0 : i32
    %c0_i32_1 = arith.constant 0 : i32
    return %arg0, %c0_i32, %c0_i32_0 : i32, i32, i32
  }
}

</mosaic_0001>

<bundles_post_ra>
// kernel: tpu_custom_call.1
= control target key start
LH: loop header
LB: loop body
LE: loop exit
PB: predicated region body
PF: predicated region fallthrough
CT: control target
= control target key end

     0   :  { %9 = vsyncpa [#allocation3], 0  ;;  %s1557_s0 = inlined_call_operand.hbm [shape: f32[2,8,128], index: 0, kind: input, shape index: {}]   ;;  %s1558_s1 = inlined_call_operand.vmem [shape: f32[4,8,8], index: 1, kind: input, shape index: {}]   ;;  %s1559_s2 = inlined_call_operand.hbm [shape: f32[4,8,8], index: 2, kind: input, shape index: {}]   ;;  %s1560_s3 = inlined_call_operand.vmem [shape: f32[4,8,1], index: 3, kind: input, shape index: {}]   ;;  %s1561_s4 = inlined_call_operand.hbm [shape: f32[2,8,128], index: 4, kind: output, shape index: {}]  }
   0x1   :  { %11 = vsyncpa [#allocation3 + $0x1], 0 }
   0x2   :  { %12 = vsyncpa [#allocation6], 0 }
   0x3   :  { %13 = vsyncpa [#allocation4], 0 }
   0x4   :  { %15 = vsyncpa [#allocation4 + $0x1], 0  ;;  %s1295_s15 = smov 0   ;;  %s1297_s16 = smov 0  }
   0x5   :  { %s1299_s17 = smov 0   ;;  %s1301_s18 = smov 0  }
   0x6 LB: > { %s1316_s19 = sadd.s32 4294967295, %s1256_s18   ;;  %s972_s20 = sadd.s32 4294967294, %s1256_s18   ;;  %s1256_s18 = sphi %s1301_s18, %s1581_s18   ;;  %s1252_s17 = sphi %s1299_s17, %s1580_s17   ;;  %s1248_s16 = sphi %s1297_s16, %s1579_s16   ;;  %s1244_s15 = sphi %s1295_s15, %s1578_s15  }
   0x7   : > { %p41_p0 = scmp.ne.s32.totalorder %s1248_s16, %s1244_s15  ;;  %p1562_p1 = scmp.eq.s32.totalorder %s1316_s19, 0 }
   0x8   : > { %p134_p3 = scmp.eq.s32.totalorder %s972_s20, 1  ;;  %p973_p5 = scmp.ge.s32.totalorder %s1256_s18, 1 }
   0x9   : > { %p1325_p4 = por %p1562_p1, %p41_p0  ;;  %p141_p7 = scmp.lt.s32.totalorder %s1256_s18, 3 }
   0xa   : > { %p1330_p6 = por %p134_p3, %p41_p0  ;;  %s1258_s24 = smov [#allocation5]  }
   0xb   : > { %s1565_s21 = scalar_select %p1325_p4, 1, 0 }
   0xc   : > { %s1566_s22 = scalar_select %p1330_p6, 1, 0 }
   0xd   : > { %p1335_p8 = pnand %p973_p5, %p141_p7  ;;  %s156_s25 = sshll.u32 %s1258_s24, 4  ;;  %s1339_s25 = int_to_ptr.vmem [resolvable:$true] %s156_s25 }
   0xe   : > { %s1351_s27 = sadd.s32 1, %s1256_s18   ;;  %s28_s28 = sadd.s32 1, %s1252_s17 }
   0xf   : > { %s1567_s23 = scalar_select %p1335_p8, 1, 0 }
  0x10   : > { %p1068_p9 = pneg %p1335_p8  ;;  %s25_s29 = ssub.s32 %s1256_s18, %s1351_s27 }
  0x11   : > { %s1128_s6 = scalar_lea.hbm %s1559_s2, 512 }
  0x12   : > { %p1346_p11 = pnand %p1068_p9, %p1562_p1  ;;  %p1129_p12 = scmp.ne.s32.totalorder %s1559_s2, %s1128_s6 }
  0x13   : > { %p1135_p5 = scmp.lt.u32.totalorder %s1128_s6, %s1559_s2 }
  0x14   : > { %p1130_p13 = pneg %p1346_p11 }
  0x16   : > { %p1131_p0 = pnand %p1130_p13, %p1129_p12 }
  0x18   : > { %p1132_p3 = pneg %p1131_p0 }
  0x1a   : > { %p1137_p7 = pnand %p1135_p5, %p1132_p3 }
  0x1c   : > { %1140 = shalt.err (!%p1137_p7)
}
  0x1d   : > { %s1141_s11 = scalar_lea.vmem %s1339_s25, 512  ;;  %p1149_p2 = scmp.lt.s32.totalorder %s1339_s25, %s1339_s25 }
  0x1e   : > { %p1142_p9 = scmp.ne.s32.totalorder %s1339_s25, %s1141_s11  ;;  %p1150_p6 = scmp.lt.s32.totalorder %s1141_s11, %s1141_s11 }
  0x20   : > { %p1144_p10 = pnand %p1142_p9, %p1130_p13  ;;  %p1151_p4 = por %p1150_p6, %p1149_p2 }
  0x22   : > { %p1145_p1 = pneg %p1144_p10 }
  0x24   : > { %p1152_p8 = pnand %p1151_p4, %p1145_p1 }
  0x26   : > { %1155 = shalt.err (!%p1152_p8)
}
  0x27   : > { %s1259_s12 = smov 128   ;;  %s1260_s13 = smov 8  }
  0x28   : > { %1071 = dma.hbm_to_vmem [thread:$0]  (!%p1346_p11), %s1559_s2, 512, %s1339_s25, [#allocation6], %s1259_s12, %s1259_s12, %s1260_s13  }
  0x29   : > { %p26_p2 = scmp.eq.s32.totalorder %s25_s29, 0  ;;  %p35_p1 = scmp.ne.s32.totalorder %s1252_s17, %s1248_s16 }
  0x2a   : > { %p36_p4 = scmp.eq.s32.totalorder %s1256_s18, 0  ;;  %p1081_p6 = scmp.lt.s32.totalorder %s1256_s18, 2 }
  0x2b   : > { %s1382_s24 = scalar_select %p26_p2, %s1252_s17, %s28_s28  }
  0x2c   : > { %p37_p8 = por %p36_p4, %p35_p1  ;;  %p1569_p10 = scmp.eq.s32.totalorder %s1316_s19, 1 }
  0x2d   : > { %s173_s5 = sand.u32 1, %s1252_s17   ;;  %s977_s6 = sshll.u32 %s1256_s18, 7 }
  0x2e   : > { %p1386_p12 = por %p1569_p10, %p35_p1  ;;  %s976_s7 = sshll.u32 %s173_s5, 3 }
  0x2f   : > { %s1395_s9 = scalar_lea.hbm %s1557_s0, %s977_s6  ;;  %s177_s25 = scalar_lea.vmem [#allocation2], %s976_s7 }
  0x30   : > { %s184_s28 = sshll.u32 %s177_s25, 4  ;;  %p1397_p11 = pnand %p1081_p6, %p37_p8  ;;  %s1401_s28 = int_to_ptr.vmem [resolvable:$true] %s184_s28 }
  0x31   : > { %s174_s10 = scalar_lea.sflag [#allocation3], %s173_s5  ;;  %s1156_s11 = scalar_lea.hbm %s1395_s9, 128 }
  0x32   : > { %p1157_p13 = scmp.ne.s32.totalorder %s1395_s9, %s1156_s11  ;;  %p1158_p0 = pneg %p1397_p11 }
  0x33   : > { %s1161_s14 = scalar_lea.hbm %s1557_s0, 256  ;;  %p1162_p7 = scmp.lt.u32.totalorder %s1395_s9, %s1557_s0 }
  0x34   : > { %p1159_p3 = pnand %p1158_p0, %p1157_p13  ;;  %p1163_p9 = scmp.lt.u32.totalorder %s1161_s14, %s1156_s11 }
  0x35   : > { %p1165_p1 = scmp.lt.u32.totalorder %s1156_s11, %s1395_s9 }
  0x36   : > { %p1160_p5 = pneg %p1159_p3  ;;  %p1164_p2 = por %p1163_p9, %p1162_p7 }
  0x38   : > { %p1166_p4 = por %p1165_p1, %p1164_p2 }
  0x3a   : > { %p1167_p6 = pnand %p1166_p4, %p1160_p5 }
  0x3c   : > { %1170 = shalt.err (!%p1167_p6)
}
  0x3d   : > { %s1171_s5 = scalar_lea.vmem %s1401_s28, 128  ;;  %s1261_s7 = smov [#allocation2]  }
  0x3e   : > { %p1172_p8 = scmp.ne.s32.totalorder %s1401_s28, %s1171_s5  ;;  %s1176_s26 = sshll.u32 %s1261_s7, 4  ;;  %s1177_s26 = int_to_ptr.vmem [resolvable:$false] %s1176_s26 }
  0x3f   : > { %s1178_s8 = scalar_lea.vmem %s1177_s26, 256  ;;  %p1179_p3 = scmp.lt.s32.totalorder %s1401_s28, %s1177_s26 }
  0x40   : > { %p1174_p10 = pnand %p1172_p8, %p1158_p0  ;;  %p1180_p7 = scmp.lt.s32.totalorder %s1178_s8, %s1171_s5 }
  0x42   : > { %p1175_p13 = pneg %p1174_p10  ;;  %p1181_p9 = por %p1180_p7, %p1179_p3 }
  0x44   : > { %p1182_p2 = pnand %p1181_p9, %p1175_p13 }
  0x46   : > { %1185 = shalt.err (!%p1182_p2)
}
  0x47   : > { %1075 = dma.hbm_to_vmem [thread:$0]  (!%p1397_p11), %s1395_s9, 128, %s1401_s28, %s174_s10  }
  0x48   : > { %p1572_p5 = scmp.ne.s32.totalorder %s1567_s23, 0 }
  0x49   : > { %s1431_s25 = sand.u32 (!%p1572_p5), 1, %s1248_s16   ;;  %p1573_p0 = scmp.ne.s32.totalorder (!%p1572_p5), %s1565_s21, 0 }
  0x4a   : > { %193 = sbr.rel (%p1572_p5) target bundleno = 1431 (0x597), region = 36  ;;  %s979_s11 = sshll.u32 (!%p1572_p5), %s1431_s25, 3 }
  0x4b   : > { %s196_s12 = scalar_lea.sflag (!%p1572_p5), [#allocation3], %s1431_s25  ;;  %s199_s13 = scalar_lea.vmem (!%p1572_p5), [#allocation2], %s979_s11 }
  0x51   : > { %1231 = dma.done.wait (%p1573_p0), %s196_s12, 128  }
  0x52   : > { %1233 = vsyncadd (%p1573_p0), %s196_s12, 4294967168  ;;  %p1574_p11 = scmp.eq.s32.totalorder %s1316_s19, 0 }
  0x54   : > { %1235 = dma.done.wait (%p1574_p11), [#allocation6], 512   ;;  %p1575_p1 = pmov %p1574_p11 }
  0x55   : > { %v1262_v0 = vmov 0.0   ;;  %vm1263_vm0 = vmmov 0   ;;  %v1264_v1 = vmov 0   ;;  %vm237_vm1 = vcmask 64512   ;;  %v228_v2 = vld [vmem:[%s199_s13] sm:$0xff]  ;;  %v236_v3 = vld [vmem:[#allocation5] sm:$0xff] }
  0x56   : > { %1237 = vsyncadd (%p1575_p1), [#allocation6], 4294966784  ;;  %1020 = vmatprep.subr.mxu0 %v1262_v0  ;;  %1022 = vmatprep.mubr.msk.f32.mxu0 %vm1263_vm0, %v1262_v0  ;;  %s1265_s21 = smov 1   ;;  %v384_v4 = vld [vmem:[%s1560_s3] sm:$0xff]  ;;  %v994_v5 = vld [vmem:[%s1560_s3 + $0x10] sm:$0xff]  ;;  %v229_v7 = vlaneseq  ;;  %s1266_s5 = smov 2  }
  0x57   : > { %1025 = vmatprep.subr.mxu1 %v1262_v0  ;;  %1027 = vmatprep.mubr.msk.f32.mxu1 %vm1263_vm0, %v1262_v0  ;;  %v999_v6 = vld [vmem:[%s1560_s3 + $0x18] sm:$0xff]  ;;  %v235_v9 = vld [vmem:[%s1558_s1] sm:$0xff]  ;;  %v989_v19 = vld [vmem:[%s1560_s3 + $0x8] sm:$0xff]  ;;  %s1267_s13 = smov 4   ;;  %s1268_s9 = smov 8  }
  0x58   : > { %1126 = vset.pattern.permute.xlu0 %v1264_v1  ;;  %1127 = vset.pattern.permute.xlu1 %v1264_v1  ;;  %v1464_v8 = vand.u32 127, %v229_v7  ;;  %v398_v18 = vld [vmem:[#allocation5 + $0x8] sm:$0xff]  ;;  %v985_v20 = vld [vmem:[%s1558_s1 + $0x8] sm:$0xff]  ;;  %v560_v29 = vld [vmem:[#allocation5 + $0x10] sm:$0xff]  ;;  %s1001_s10 = sshll.u32 %s1316_s19, 7  ;;  %s227_s14 = scalar_lea.vmem [#allocation7], %s979_s11 }
  0x59   : > { %231 = vrot.lane.b32.xlu0 %v228_v2, %s1265_s21  ;;  %1021 = vmatpush3.msra.mxu0 %v228_v2  ;;  %v990_v30 = vld [vmem:[%s1558_s1 + $0x10] sm:$0xff]  ;;  %v722_v39 = vld [vmem:[#allocation5 + $0x18] sm:$0xff]  ;;  %v995_v40 = vld [vmem:[%s1558_s1 + $0x18] sm:$0xff]  ;;  %s892_s20 = sshll.u32 %s227_s14, 4  ;;  %s1513_s7 = scalar_lea.hbm %s1561_s4, %s1001_s10  ;;  %s1515_s20 = int_to_ptr.vmem [resolvable:$true] %s892_s20 }
  0x5a   : > { %1023 = vmatmul.mubr.msk.f32.vlgmr.msra.gmra.mrb[0].mxu0 %vm237_vm1, %v236_v3  ;;  %1030 = vmatprep.subr.mxu0 %v1262_v0  ;;  %vm233_vm2 = vcmp.ge.s32.totalorder %v1464_v8, 1  ;;  %vm393_vm3 = vcmp.ge.s32.totalorder %v1464_v8, 2  ;;  %vm555_vm4 = vcmp.ge.s32.totalorder %v1464_v8, 4  ;;  %vm717_vm5 = vcmp.ge.s32.totalorder %v1464_v8, 8  ;;  %s879_s26 = scalar_lea.sflag [#allocation4], %s1431_s25  ;;  %s1186_s19 = scalar_lea.vmem %s1515_s20, 128 }
  0x5b   : > { %1032 = vmatprep.mubr.msk.f32.mxu0 %vm1263_vm0, %v1262_v0  ;;  %p1187_p4 = scmp.ne.s32.totalorder %s1515_s20, %s1186_s19  ;;  %s1269_s11 = smov [#allocation7]  }
  0x5c   : > { %s1190_s8 = sshll.u32 %s1269_s11, 4  ;;  %s1191_s8 = int_to_ptr.vmem [resolvable:$false] %s1190_s8 }
  0x5d   : > { %387 = vperm.xlu0 %1126, %v384_v4   ;;  %p1188_p6 = pnand %p1187_p4, %p1386_p12  ;;  %s1192_s12 = scalar_lea.vmem %s1191_s8, 256 }
  0x5e   : > { %p1193_p10 = scmp.lt.s32.totalorder %s1515_s20, %s1191_s8  ;;  %p1194_p13 = scmp.lt.s32.totalorder %s1192_s12, %s1186_s19 }
  0x5f   : > { %p1189_p8 = pneg %p1188_p6 }
  0x60   : > { %p1195_p3 = por %p1194_p13, %p1193_p10 }
  0x61   : > { %711 = vperm.xlu0 %1126, %v994_v5  }
  0x62   : > { %p1196_p7 = pnand %p1195_p3, %p1189_p8 }
  0x65   : > { %873 = vperm.xlu0 %1126, %v999_v6  }
  0xcb   : > { %v232_v10 = vpop.permute.xlu0 %231 }
  0xcc   : > { %1026 = vmatpush3.msk.msra.mxu1 %vm233_vm2, %v232_v10 }
  0xcd   : > { %1028 = vmatmul.mubr.msk.f32.vlgmr.msra.gmra.mrb[0].mxu1 %vm237_vm1, %v235_v9  ;;  %1035 = vmatprep.subr.mxu1 %v1262_v0 }
  0xce   : > { %1037 = vmatprep.mubr.msk.f32.mxu1 %vm1263_vm0, %v1262_v0 }
  0xdc   : > { %v388_v16 = vpop.permute.xlu0 %387 }
  0xe0   : > { %v712_v37 = vpop.permute.xlu0 %711 }
  0xe4   : > { %v874_v47 = vpop.permute.xlu0 %873 }
 0x12d   : > { %v307_v11 = vpop.f32.mrb[0].mxu0 }
 0x12e   : > { %v1024_v12 = vpop.f32.mrb[1].mxu0 }
 0x1a0   : > { %v380_v13 = vpop.f32.mrb[0].mxu1 }
 0x1a1   : > { %v381_v14 = vadd.f32 %v380_v13, %v307_v11  ;;  %v1029_v15 = vpop.f32.mrb[1].mxu1 }
 0x1a3   : > { %v390_v17 = vadd.f32 %v388_v16, %v381_v14 }
 0x1a5   : > { %391 = vrot.lane.b32.xlu1 %v390_v17, %s1266_s5  ;;  %1031 = vmatpush3.msra.mxu0 %v390_v17 }
 0x1a6   : > { %1033 = vmatmul.mubr.msk.f32.vlgmr.msra.gmra.mrb[2].mxu0 %vm237_vm1, %v398_v18  ;;  %1040 = vmatprep.subr.mxu0 %v1262_v0 }
 0x1a7   : > { %1042 = vmatprep.mubr.msk.f32.mxu0 %vm1263_vm0, %v1262_v0 }
 0x1a9   : > { %549 = vperm.xlu1 %1127, %v989_v19  }
 0x217   : > { %v392_v21 = vpop.permute.xlu1 %391 }
 0x218   : > { %1036 = vmatpush3.msk.msra.mxu1 %vm393_vm3, %v392_v21 }
 0x219   : > { %1038 = vmatmul.mubr.msk.f32.vlgmr.msra.gmra.mrb[2].mxu1 %vm237_vm1, %v985_v20  ;;  %1045 = vmatprep.subr.mxu1 %v1262_v0 }
 0x21a   : > { %1047 = vmatprep.mubr.msk.f32.mxu1 %vm1263_vm0, %v1262_v0 }
 0x228   : > { %v550_v25 = vpop.permute.xlu1 %549 }
 0x279   : > { %v468_v22 = vpop.f32.mrb[2].mxu0 }
 0x27a   : > { %v1034_v23 = vpop.f32.mrb[3].mxu0 }
 0x2ec   : > { %v541_v24 = vpop.f32.mrb[2].mxu1 }
 0x2ed   : > { %v542_v26 = vadd.f32 %v541_v24, %v468_v22  ;;  %v1039_v27 = vpop.f32.mrb[3].mxu1 }
 0x2ef   : > { %v552_v28 = vadd.f32 %v550_v25, %v542_v26 }
 0x2f1   : > { %553 = vrot.lane.b32.xlu1 %v552_v28, %s1267_s13  ;;  %1041 = vmatpush3.msra.mxu0 %v552_v28 }
 0x2f2   : > { %1043 = vmatmul.mubr.msk.f32.vlgmr.msra.gmra.mrb[4].mxu0 %vm237_vm1, %v560_v29  ;;  %1050 = vmatprep.subr.mxu0 %v1262_v0 }
 0x2f3   : > { %1052 = vmatprep.mubr.msk.f32.mxu0 %vm1263_vm0, %v1262_v0 }
 0x363   : > { %v554_v31 = vpop.permute.xlu1 %553 }
 0x364   : > { %1046 = vmatpush3.msk.msra.mxu1 %vm555_vm4, %v554_v31 }
 0x365   : > { %1048 = vmatmul.mubr.msk.f32.vlgmr.msra.gmra.mrb[4].mxu1 %vm237_vm1, %v990_v30  ;;  %1055 = vmatprep.subr.mxu1 %v1262_v0 }
 0x366   : > { %1057 = vmatprep.mubr.msk.f32.mxu1 %vm1263_vm0, %v1262_v0 }
 0x3c5   : > { %v630_v32 = vpop.f32.mrb[4].mxu0 }
 0x3c6   : > { %v1044_v33 = vpop.f32.mrb[5].mxu0 }
 0x438   : > { %v703_v34 = vpop.f32.mrb[4].mxu1 }
 0x439   : > { %v704_v35 = vadd.f32 %v703_v34, %v630_v32  ;;  %v1049_v36 = vpop.f32.mrb[5].mxu1 }
 0x43b   : > { %v714_v38 = vadd.f32 %v712_v37, %v704_v35 }
 0x43d   : > { %715 = vrot.lane.b32.xlu1 %v714_v38, %s1268_s9  ;;  %1051 = vmatpush3.msra.mxu0 %v714_v38 }
 0x43e   : > { %1053 = vmatmul.mubr.msk.f32.vlgmr.msra.gmra.mrb[6].mxu0 %vm237_vm1, %v722_v39 }
 0x4af   : > { %v716_v41 = vpop.permute.xlu1 %715 }
 0x4b0   : > { %1056 = vmatpush3.msk.msra.mxu1 %vm717_vm5, %v716_v41 }
 0x4b1   : > { %1058 = vmatmul.mubr.msk.f32.vlgmr.msra.gmra.mrb[6].mxu1 %vm237_vm1, %v995_v40 }
 0x511   : > { %v792_v42 = vpop.f32.mrb[6].mxu0 }
 0x512   : > { %v1054_v43 = vpop.f32.mrb[7].mxu0 }
 0x584   : > { %v865_v44 = vpop.f32.mrb[6].mxu1 }
 0x585   : > { %v866_v45 = vadd.f32 %v865_v44, %v792_v42  ;;  %v1059_v46 = vpop.f32.mrb[7].mxu1 }
 0x587   : > { %v876_v48 = vadd.f32 %v874_v47, %v866_v45 }
 0x589   : > { %877 = vst [vmem:[%s227_s14] sm:$0xff] %v876_v48 }
 0x58a   : > { %1199 = shalt.err (!%p1196_p7)
}
 0x58b   : > { %s1200_s25 = scalar_lea.hbm %s1513_s7, 128  ;;  %s1204_s23 = scalar_lea.hbm %s1561_s4, 256 }
 0x58c   : > { %p1201_p9 = scmp.ne.s32.totalorder %s1513_s7, %s1200_s25  ;;  %p1205_p0 = scmp.lt.u32.totalorder %s1513_s7, %s1561_s4 }
 0x58d   : > { %p1206_p11 = scmp.lt.u32.totalorder %s1204_s23, %s1200_s25  ;;  %p1208_p4 = scmp.lt.u32.totalorder %s1200_s25, %s1513_s7 }
 0x58e   : > { %p1202_p2 = pnand %p1201_p9, %p1386_p12 }
 0x58f   : > { %p1207_p1 = por %p1206_p11, %p1205_p0 }
 0x590   : > { %p1203_p5 = pneg %p1202_p2 }
 0x591   : > { %p1209_p6 = por %p1208_p4, %p1207_p1 }
 0x593   : > { %p1210_p8 = pnand %p1209_p6, %p1203_p5 }
 0x595   : > { %1213 = shalt.err (!%p1210_p8)
}
 0x596   : > { %1066 = dma.vmem_to_hbm [thread:$0]  (%p1386_p12), %s1515_s20, 128, %s1513_s7, %s879_s26  }
 0x597 PF: > { %s904_s29 = sand.u32 1, %s1244_s15   ;;  %p1576_p10 = scmp.ne.s32.totalorder %s1566_s22, 0 }
 0x598   : > { %p1577_p13 = scmp.ge.s32.totalorder %s1256_s18, 2  ;;  %s905_s10 = scalar_lea.sflag [#allocation4], %s904_s29 }
 0x59a   : > { %p1077_p3 = pnand %p1577_p13, %p1576_p10 }
 0x59c   : > { %1239 = dma.done.wait (!%p1077_p3), %s905_s10, 128  }
 0x59d   : > { %1241 = vsyncadd (!%p1077_p3), %s905_s10, 4294967168  ;;  %p18_p7 = scmp.ge.s32.totalorder %s1351_s27, 4   ;;  %s1578_s15 = smov %s1248_s16 }
 0x59e   : > { %s1579_s16 = smov %s1252_s17  ;;  %s1580_s17 = smov %s1382_s24 }
 0x59f   : > { %s1581_s18 = smov %s1351_s27  ;;  %20 = sbr.rel (!%p18_p7) target bundleno = 6 (0x6), region = 94 }
 0x5a6   :  { %910 = vsyncpa [#allocation3], 1 }
 0x5a7   :  { %912 = vsyncpa [#allocation3 + $0x1], 1 }
 0x5a8   :  { %913 = vsyncpa [#allocation6], 1 }
 0x5a9   :  { %914 = vsyncpa [#allocation4], 1 }
 0x5aa   :  { %916 = vsyncpa [#allocation4 + $0x1], 1 }

</bundles_post_ra>
